<compile_context>
chip_gen: v7x
topology: tpu7x:2x2x1
jax: 0.10.0
libtpu: 0.0.40
codegen_flags: <defaults>
</compile_context>

<pallas_src>
import functools

import jax
import jax.numpy as jnp
from jax.experimental import pallas as pl
from jax.experimental.pallas import tpu as pltpu


def _round_up(n: int, m: int) -> int:
    return (n + m - 1) // m * m


def _vmem_budget_bytes() -> int:
    """Physical VMEM capacity minus ~20% headroom (generation-aware)."""
    cap = None
    try:
        cap = int(pltpu.get_tpu_info().vmem_capacity_bytes)
    except Exception:  # older jax / non-TPU backend: fall back to device_kind
        cap = None
    if not cap:
        kind = ""
        try:
            kind = (jax.devices()[0].device_kind or "").lower()
        except Exception:
            pass
        cap = 64 * 1024 * 1024 if "v7" in kind else 128 * 1024 * 1024
    return int(cap * 0.8)


def _has_bf16_vpu() -> bool:
    """v6e/v7x have bf16 VPU/EUP; v5e and older do not."""
    try:
        kind = (jax.devices()[0].device_kind or "").lower()
    except Exception:
        return False
    return not any(tag in kind for tag in ("v2", "v3", "v4", "v5"))


# ---------------------------------------------------------------------------
# One-time parameter preparation (hoisted out of the per-call path).
# ---------------------------------------------------------------------------
def prepare_spatial_lm_head_params(w_dense, b_dense, w_out, b_out, *,
                                   compute_dtype=jnp.bfloat16):
    """Pad feature dims to lane multiples (128) and cast weights to the matmul
    dtype ONCE.  Call at model-load time; do not re-run per forward call.

    Weight layout is (in_features, out_features): the kernel computes
    y = x @ W + b, i.e. PyTorch's x @ W.T + b with W stored pre-transposed.
    """
    din, h = w_dense.shape
    l = w_out.shape[1]
    dp, hp, lp = _round_up(din, 128), _round_up(h, 128), _round_up(l, 128)
    return dict(
        w1=jnp.pad(w_dense, ((0, dp - din), (0, hp - h))).astype(compute_dtype),
        b1=jnp.pad(b_dense, (0, hp - h)).astype(jnp.float32).reshape(1, hp),
        w2=jnp.pad(w_out, ((0, hp - h), (0, lp - l))).astype(compute_dtype),
        b2=jnp.pad(b_out, (0, lp - l)).astype(jnp.float32).reshape(1, lp),
        din=din, h=h, l=l,
    )


# ---------------------------------------------------------------------------
# Kernels
# ---------------------------------------------------------------------------
def _resident_kernel(x_ref, w1_ref, b1_ref, w2_ref, b2_ref, out_ref, *,
                     compute_dtype, act_dtype):
    # Fused dense -> tanh -> out_proj with both weights resident in VMEM.
    x = x_ref[...].astype(compute_dtype)          # in-kernel cast (no HBM round trip)
    h = jnp.dot(x, w1_ref[...], preferred_element_type=jnp.float32)      # MXU, f32 acc
    h = jnp.tanh(h.astype(act_dtype) + b1_ref[...].astype(act_dtype))    # VPU + EUP
    o = jnp.dot(h.astype(compute_dtype), w2_ref[...],
                preferred_element_type=jnp.float32)
    out_ref[...] = (o + b2_ref[...]).astype(out_ref.dtype)


def _kstream_kernel(x_ref, w1_ref, b1_ref, w2_ref, b2_ref, out_ref, acc_ref, *,
                    compute_dtype, act_dtype):
    # w_dense streamed over the K grid axis; f32 accumulator in VMEM scratch.
    k = pl.program_id(1)

    @pl.when(k == 0)
    def _():
        acc_ref[...] = jnp.zeros_like(acc_ref)

    x = x_ref[...].astype(compute_dtype)
    acc_ref[...] += jnp.dot(x, w1_ref[...], preferred_element_type=jnp.float32)

    @pl.when(k == pl.num_programs(1) - 1)
    def _():
        h = jnp.tanh(acc_ref[...].astype(act_dtype) + b1_ref[...].astype(act_dtype))
        o = jnp.dot(h.astype(compute_dtype), w2_ref[...],
                    preferred_element_type=jnp.float32)
        out_ref[...] = (o + b2_ref[...]).astype(out_ref.dtype)


# ---------------------------------------------------------------------------
# Head wrapper
# ---------------------------------------------------------------------------
def spatial_lm_classification_head_prepared(
        x, params, *, tile_b=None, tile_k=None, mode=None,
        act_dtype=None, allow_xla_fast_path=True):
    """x: (B, Din) activations; params: output of prepare_spatial_lm_head_params.

    mode: None (auto), "resident" (weights fully in VMEM) or "kstream"
    (w_dense streamed over a K grid axis — used when weights don't fit VMEM,
    e.g. large hidden sizes on v7x's 64 MiB VMEM).
    """
    w1, b1, w2, b2 = params["w1"], params["b1"], params["w2"], params["b2"]
    din, h, l = params["din"], params["h"], params["l"]
    dp, hp = w1.shape
    lp = w2.shape[1]
    b = x.shape[0]
    assert x.shape[1] == din, (x.shape, din)

    compute_dtype = w1.dtype
    out_dtype = x.dtype
    if act_dtype is None:
        # bf16 bias-add + tanh halves VPU/EUP work on v6e/v7x; v5e lacks bf16 VPU/EUP.
        act_dtype = jnp.bfloat16 if _has_bf16_vpu() else jnp.float32

    # Tiny shapes (e.g. the shipped Din=32, L=4, B=8 config): Pallas launch +
    # pad/slice overhead dwarfs ~10 KFLOP of compute; let XLA fuse it instead.
    if allow_xla_fast_path and mode is None and b * dp * hp <= (1 << 21):
        xk = x.astype(compute_dtype)
        if dp != din:
            xk = jnp.pad(xk, ((0, 0), (0, dp - din)))
        hh = jnp.dot(xk, w1, preferred_element_type=jnp.float32)
        hh = jnp.tanh(hh.astype(act_dtype) + b1.astype(act_dtype))
        o = jnp.dot(hh.astype(compute_dtype), w2,
                    preferred_element_type=jnp.float32) + b2
        return o[:, :l].astype(out_dtype)

    if tile_b is None:
        tile_b = min(256, _round_up(b, 16))     # 16-row bf16 sublane packing; sweep {128,256}
    tile_b = max(16, _round_up(tile_b, 16))
    bp = _round_up(b, tile_b)

    x_item = jnp.dtype(x.dtype).itemsize
    out_item = jnp.dtype(out_dtype).itemsize
    c_item = jnp.dtype(compute_dtype).itemsize
    a_item = jnp.dtype(act_dtype).itemsize
    w_bytes = (dp * hp + hp * lp) * c_item
    bias_bytes = (hp + lp) * 4
    budget = _vmem_budget_bytes()

    # Resident-mode footprint: weights occupy double-buffered block slots but
    # are DMA'd only once (constant index_map).
    resident_foot = (2 * tile_b * dp * x_item            # x tiles (pipelined)
                     + 2 * w_bytes + 2 * bias_bytes      # weights + biases
                     + 2 * tile_b * lp * out_item        # out tiles
                     + tile_b * hp * (4 + a_item + c_item))  # acc / tanh / bf16 intermediates

    if mode is None:
        mode = "resident" if (resident_foot <= budget or dp <= 128) else "kstream"

    cost = pl.CostEstimate(
        flops=2 * bp * dp * hp + 2 * bp * hp * lp,
        transcendentals=bp * hp,
        bytes_accessed=(bp * dp * x_item + w_bytes + bias_bytes + bp * lp * out_item),
    )
    compute_kw = dict(compute_dtype=compute_dtype, act_dtype=act_dtype)

    needs_pad = (bp != b) or (dp != din)
    if needs_pad:
        # Rare path (Din % 128 != 0 or ragged batch): fuse pad with the bf16
        # cast so the kernel reads half the bytes.
        xk = jnp.pad(x, ((0, bp - b), (0, dp - din))).astype(compute_dtype)
    else:
        xk = x  # native dtype; cast to bf16 inside the kernel.

    if mode == "resident":
        vmem_limit = int(min(budget, max(resident_foot * 3 // 2, 16 * 1024 * 1024)))
        out = pl.pallas_call(
            functools.partial(_resident_kernel, **compute_kw),
            out_shape=jax.ShapeDtypeStruct((bp, lp), out_dtype),
            grid_spec=pltpu.PrefetchScalarGridSpec(
                num_scalar_prefetch=0,
                grid=(bp // tile_b,),
                in_specs=[
                    pl.BlockSpec((tile_b, dp), lambda i: (i, 0)),   # x tile
                    pl.BlockSpec((dp, hp), lambda i: (0, 0)),       # w_dense (resident)
                    pl.BlockSpec((1, hp), lambda i: (0, 0)),        # b_dense
                    pl.BlockSpec((hp, lp), lambda i: (0, 0)),       # w_out (resident)
                    pl.BlockSpec((1, lp), lambda i: (0, 0)),        # b_out
                ],
                out_specs=pl.BlockSpec((tile_b, lp), lambda i: (i, 0)),
            ),
            compiler_params=pltpu.CompilerParams(
                dimension_semantics=("parallel",),
                vmem_limit_bytes=vmem_limit),
            cost_estimate=cost,
        )(xk, w1, b1, w2, b2)
    else:
        # K-streaming: stream w_dense over an "arbitrary" K axis.
        if tile_k is None:
            tile_k = 512
        tile_k = min(_round_up(tile_k, 128), dp)
        while dp % tile_k:
            tile_k -= 128
        xk_item = jnp.dtype(xk.dtype).itemsize
        kstream_foot = (2 * tile_b * tile_k * xk_item       # x tiles
                        + 2 * tile_k * hp * c_item          # w_dense tiles (pipelined)
                        + 2 * (hp * lp * c_item + bias_bytes)
                        + tile_b * hp * 4                   # f32 accumulator scratch
                        + 2 * tile_b * lp * out_item
                        + tile_b * hp * (a_item + c_item))
        vmem_limit = int(min(budget, max(kstream_foot * 3 // 2, 16 * 1024 * 1024)))
        out = pl.pallas_call(
            functools.partial(_kstream_kernel, **compute_kw),
            out_shape=jax.ShapeDtypeStruct((bp, lp), out_dtype),
            grid_spec=pltpu.PrefetchScalarGridSpec(
                num_scalar_prefetch=0,
                grid=(bp // tile_b, dp // tile_k),
                in_specs=[
                    pl.BlockSpec((tile_b, tile_k), lambda i, k: (i, k)),  # x tile
                    pl.BlockSpec((tile_k, hp), lambda i, k: (k, 0)),      # w_dense K-tile
                    pl.BlockSpec((1, hp), lambda i, k: (0, 0)),           # b_dense
                    pl.BlockSpec((hp, lp), lambda i, k: (0, 0)),          # w_out
                    pl.BlockSpec((1, lp), lambda i, k: (0, 0)),           # b_out
                ],
                out_specs=pl.BlockSpec((tile_b, lp), lambda i, k: (i, 0)),
                scratch_shapes=[pltpu.VMEM((tile_b, hp), jnp.float32)],
            ),
            compiler_params=pltpu.CompilerParams(
                dimension_semantics=("parallel", "arbitrary"),
                vmem_limit_bytes=vmem_limit),
            cost_estimate=cost,
        )(xk, w1, b1, w2, b2)

    return out[:b, :l]


def spatial_lm_classification_head(x, w_dense, b_dense, w_out, b_out, **kwargs):
    """Convenience wrapper: prepares (pads + casts) the weights and runs the head.

    For serving, call prepare_spatial_lm_head_params() ONCE and use
    spatial_lm_classification_head_prepared() so the weight pad/cast does not
    re-run every call; under jit the prepare step is constant-folded anyway.
    """
    params = prepare_spatial_lm_head_params(
        w_dense, b_dense, w_out, b_out,
        compute_dtype=kwargs.pop("compute_dtype", jnp.bfloat16))
    return spatial_lm_classification_head_prepared(x, params, **kwargs)


# ---------------------------------------------------------------------------
# Pure-JAX reference (module semantics; dropout = identity in eval mode)
# ---------------------------------------------------------------------------
def reference(x, w_dense, b_dense, w_out, b_out, *, matmul_dtype=jnp.float32):
    h = jnp.dot(x.astype(matmul_dtype), w_dense.astype(matmul_dtype),
                preferred_element_type=jnp.float32) + b_dense
    h = jnp.tanh(h)
    return jnp.dot(h.astype(matmul_dtype), w_out.astype(matmul_dtype),
                   preferred_element_type=jnp.float32) + b_out


if __name__ == "__main__":
    keys = jax.random.split(jax.random.PRNGKey(0), 10)

    # --- Test 1: shipped config (hidden_size=32, num_labels=4, batch=8),
    # forced through the Pallas resident-weights path (the default would take
    # the XLA fast path for a shape this small).
    B, H, L = 8, 32, 4
    x = jax.random.normal(keys[0], (B, H), dtype=jnp.float32)
    w_dense = 0.02 * jax.random.normal(keys[1], (H, H), dtype=jnp.float32)
    b_dense = 0.01 * jax.random.normal(keys[2], (H,), dtype=jnp.float32)
    w_out = 0.02 * jax.random.normal(keys[3], (H, L), dtype=jnp.float32)
    b_out = 0.01 * jax.random.normal(keys[4], (L,), dtype=jnp.float32)

    params = prepare_spatial_lm_head_params(w_dense, b_dense, w_out, b_out)  # once, at load
    out = spatial_lm_classification_head_prepared(
        x, params, mode="resident", allow_xla_fast_path=False)
    out = jax.block_until_ready(out)
    assert out.shape == (B, L), out.shape

    ref_bf16 = reference(x, w_dense, b_dense, w_out, b_out, matmul_dtype=jnp.bfloat16)
    ref_f32 = reference(x, w_dense, b_dense, w_out, b_out, matmul_dtype=jnp.float32)
    assert jnp.allclose(out, ref_bf16, atol=5e-3, rtol=5e-2), "resident: mismatch vs bf16 ref"
    assert jnp.allclose(out, ref_f32, atol=2e-2, rtol=2e-2), "resident: mismatch vs f32 ref"

    # The XLA fast path (default for this tiny shape) must agree.
    out_fast = jax.block_until_ready(spatial_lm_classification_head_prepared(x, params))
    assert out_fast.shape == (B, L)
    assert jnp.allclose(out_fast, out, atol=5e-3, rtol=5e-2), "fast path mismatch"

    # --- Test 2: exercise the K-streaming path (the mode auto-selected when
    # the resident weight footprint exceeds the VMEM budget, e.g. v7x at large
    # hidden sizes).  Forced here at a small, fast shape.
    B2, D2, H2, L2 = 32, 256, 128, 8
    x2 = jax.random.normal(keys[5], (B2, D2), dtype=jnp.float32)
    w1_2 = 0.02 * jax.random.normal(keys[6], (D2, H2), dtype=jnp.float32)
    b1_2 = 0.01 * jax.random.normal(keys[7], (H2,), dtype=jnp.float32)
    w2_2 = 0.02 * jax.random.normal(keys[8], (H2, L2), dtype=jnp.float32)
    b2_2 = 0.01 * jax.random.normal(keys[9], (L2,), dtype=jnp.float32)

    params2 = prepare_spatial_lm_head_params(w1_2, b1_2, w2_2, b2_2)
    out2 = spatial_lm_classification_head_prepared(
        x2, params2, mode="kstream", tile_k=128, allow_xla_fast_path=False)
    out2 = jax.block_until_ready(out2)
    assert out2.shape == (B2, L2), out2.shape
    ref2 = reference(x2, w1_2, b1_2, w2_2, b2_2, matmul_dtype=jnp.bfloat16)
    assert jnp.allclose(out2, ref2, atol=1e-2, rtol=5e-2), "kstream: mismatch vs bf16 ref"

    print("KERNEL_OK")
</pallas_src>

<mosaic_0001>
module attributes {stable_mosaic.version = 11 : i64} {
  func.func @_resident_kernel(%arg0: i32, %arg1: memref<16x128xbf16, #tpu.memory_space<vmem>>, %arg2: memref<128x128xbf16, #tpu.memory_space<vmem>>, %arg3: memref<1x128xf32, #tpu.memory_space<vmem>>, %arg4: memref<128x128xbf16, #tpu.memory_space<vmem>>, %arg5: memref<1x128xf32, #tpu.memory_space<vmem>>, %arg6: memref<16x128xf32, #tpu.memory_space<vmem>>) attributes {dimension_semantics = [#tpu.dimension_semantics<parallel>], iteration_bounds = array<i64: 1>, scalar_prefetch = 0 : i64, scratch_operands = 0 : i64, tpu.core_type = #tpu.core_type<tc>, window_params = [{transform_indices = @transform_0, window_bounds = array<i64: 16, 128>}, {pipeline_mode = #tpu.pipeline_mode<synchronous>, transform_indices = @transform_1, window_bounds = array<i64: 128, 128>}, {pipeline_mode = #tpu.pipeline_mode<synchronous>, transform_indices = @transform_2, window_bounds = array<i64: 1, 128>}, {pipeline_mode = #tpu.pipeline_mode<synchronous>, transform_indices = @transform_3, window_bounds = array<i64: 128, 128>}, {pipeline_mode = #tpu.pipeline_mode<synchronous>, transform_indices = @transform_4, window_bounds = array<i64: 1, 128>}, {transform_indices = @transform_5, window_bounds = array<i64: 16, 128>}]} {
    %c0 = arith.constant 0 : index
    %c0_0 = arith.constant 0 : index
    %0 = vector.load %arg1[%c0, %c0_0] : memref<16x128xbf16, #tpu.memory_space<vmem>>, vector<16x128xbf16>
    %c0_1 = arith.constant 0 : index
    %c0_2 = arith.constant 0 : index
    %1 = vector.load %arg2[%c0_1, %c0_2] : memref<128x128xbf16, #tpu.memory_space<vmem>>, vector<128x128xbf16>
    %cst = arith.constant dense<0.000000e+00> : vector<16x128xf32>
    %2 = tpu.matmul %0, %1, %cst {dimension_numbers = #tpu.dot_dimension_numbers<[1], [0], [0], [1], [0, 0, 1, 1], [], []>} : vector<16x128xbf16>, vector<128x128xbf16>, vector<16x128xf32> -> vector<16x128xf32>
    %3 = arith.truncf %2 : vector<16x128xf32> to vector<16x128xbf16>
    %c0_3 = arith.constant 0 : index
    %c0_4 = arith.constant 0 : index
    %4 = vector.load %arg3[%c0_3, %c0_4] : memref<1x128xf32, #tpu.memory_space<vmem>>, vector<1x128xf32>
    %5 = arith.truncf %4 : vector<1x128xf32> to vector<1x128xbf16>
    %6 = vector.broadcast %5 : vector<1x128xbf16> to vector<16x128xbf16>
    %7 = arith.addf %3, %6 : vector<16x128xbf16>
    %8 = math.tanh %7 : vector<16x128xbf16>
    %c0_5 = arith.constant 0 : index
    %c0_6 = arith.constant 0 : index
    %9 = vector.load %arg4[%c0_5, %c0_6] : memref<128x128xbf16, #tpu.memory_space<vmem>>, vector<128x128xbf16>
    %cst_7 = arith.constant dense<0.000000e+00> : vector<16x128xf32>
    %10 = tpu.matmul %8, %9, %cst_7 {dimension_numbers = #tpu.dot_dimension_numbers<[1], [0], [0], [1], [0, 0, 1, 1], [], []>} : vector<16x128xbf16>, vector<128x128xbf16>, vector<16x128xf32> -> vector<16x128xf32>
    %c0_8 = arith.constant 0 : index
    %c0_9 = arith.constant 0 : index
    %11 = vector.load %arg5[%c0_8, %c0_9] : memref<1x128xf32, #tpu.memory_space<vmem>>, vector<1x128xf32>
    %12 = vector.broadcast %11 : vector<1x128xf32> to vector<16x128xf32>
    %13 = arith.addf %10, %12 : vector<16x128xf32>
    %c0_10 = arith.constant 0 : index
    %c0_11 = arith.constant 0 : index
    %14 = vector.load %arg6[%c0_10, %c0_11] : memref<16x128xf32, #tpu.memory_space<vmem>>, vector<16x128xf32>
    tpu.vector_store %arg6[%c0_10, %c0_11], %13 {strides = array<i32>} : memref<16x128xf32, #tpu.memory_space<vmem>>, vector<16x128xf32>,
    return
  }
  func.func @transform_0(%arg0: i32) -> (i32, i32) {
    %c0_i32 = arith.constant 0 : i32
    %c0_i32_0 = arith.constant 0 : i32
    return %arg0, %c0_i32 : i32, i32
  }
  func.func @transform_1(%arg0: i32) -> (i32, i32) {
    %c0_i32 = arith.constant 0 : i32
    %c0_i32_0 = arith.constant 0 : i32
    %c0_i32_1 = arith.constant 0 : i32
    return %c0_i32, %c0_i32_0 : i32, i32
  }
  func.func @transform_2(%arg0: i32) -> (i32, i32) {
    %c0_i32 = arith.constant 0 : i32
    %c0_i32_0 = arith.constant 0 : i32
    %c0_i32_1 = arith.constant 0 : i32
    return %c0_i32, %c0_i32_0 : i32, i32
  }
  func.func @transform_3(%arg0: i32) -> (i32, i32) {
    %c0_i32 = arith.constant 0 : i32
    %c0_i32_0 = arith.constant 0 : i32
    %c0_i32_1 = arith.constant 0 : i32
    return %c0_i32, %c0_i32_0 : i32, i32
  }
  func.func @transform_4(%arg0: i32) -> (i32, i32) {
    %c0_i32 = arith.constant 0 : i32
    %c0_i32_0 = arith.constant 0 : i32
    %c0_i32_1 = arith.constant 0 : i32
    return %c0_i32, %c0_i32_0 : i32, i32
  }
  func.func @transform_5(%arg0: i32) -> (i32, i32) {
    %c0_i32 = arith.constant 0 : i32
    %c0_i32_0 = arith.constant 0 : i32
    return %arg0, %c0_i32 : i32, i32
  }
}

</mosaic_0001>

<bundles_post_ra>
// kernel: tpu_custom_call.1
= control target key start
LH: loop header
LB: loop body
LE: loop exit
PB: predicated region body
PF: predicated region fallthrough
CT: control target
= control target key end

     0   :  { %10 = vsyncpa [#allocation3], 0  ;;  %s629_s0 = inlined_call_operand.hbm [shape: bf16[16,128], index: 0, kind: input, shape index: {}]   ;;  %s630_s1 = inlined_call_operand.hbm [shape: bf16[128,128], index: 1, kind: input, shape index: {}]   ;;  %s631_s2 = inlined_call_operand.vmem [shape: f32[1,128], index: 2, kind: input, shape index: {}]   ;;  %s632_s3 = inlined_call_operand.hbm [shape: bf16[128,128], index: 3, kind: input, shape index: {}]   ;;  %s633_s4 = inlined_call_operand.vmem [shape: f32[1,128], index: 4, kind: input, shape index: {}]   ;;  %s634_s5 = inlined_call_operand.hbm [shape: f32[16,128], index: 5, kind: output, shape index: {}]  }
   0x1   :  { %11 = vsyncpa [#allocation6], 0 }
   0x2   :  { %12 = vsyncpa [#allocation4], 0  ;;  %s519_s18 = smov [#allocation5]   ;;  %s520_s20 = smov [#allocation2]  }
   0x3   :  { %s30_s19 = sshll.u32 %s519_s18, 4  ;;  %s18_s21 = sshll.u32 %s520_s20, 4  ;;  %s31_s19 = int_to_ptr.vmem [resolvable:$true] %s30_s19  ;;  %s559_s21 = int_to_ptr.vmem [resolvable:$true] %s18_s21 }
   0x4   :  { %s425_s24 = scalar_lea.hbm %s630_s1, 1024 }
   0x5   :  { %p426_p0 = scmp.ne.s32.totalorder %s630_s1, %s425_s24  ;;  %p429_p1 = scmp.lt.u32.totalorder %s425_s24, %s630_s1 }
   0x7   :  { %p431_p2 = pnand %p429_p1, %p426_p0 }
   0x9   :  { %434 = shalt.err (!%p431_p2)
}
   0xa   :  { %s435_s29 = scalar_lea.vmem %s31_s19, 1024  ;;  %p440_p4 = scmp.lt.s32.totalorder %s31_s19, %s31_s19 }
   0xb   :  { %p436_p3 = scmp.ne.s32.totalorder %s31_s19, %s435_s29  ;;  %p441_p5 = scmp.lt.s32.totalorder %s435_s29, %s435_s29 }
   0xd   :  { %p442_p6 = por %p441_p5, %p440_p4 }
   0xf   :  { %p443_p7 = pnand %p442_p6, %p436_p3 }
  0x11   :  { %446 = shalt.err (!%p443_p7)
}
  0x12   :  { %s521_s30 = smov 64   ;;  %s522_s6 = smov 4  }
  0x13   :  { %36 = dma.hbm_to_vmem [thread:$0]  %s630_s1, 1024, %s31_s19, [#allocation6], %s521_s30, %s521_s30, %s522_s6  }
  0x14   :  { %s447_s11 = scalar_lea.hbm %s629_s0, 128 }
  0x15   :  { %p448_p8 = scmp.ne.s32.totalorder %s629_s0, %s447_s11  ;;  %p451_p9 = scmp.lt.u32.totalorder %s447_s11, %s629_s0 }
  0x17   :  { %p453_p10 = pnand %p451_p9, %p448_p8 }
  0x19   :  { %456 = shalt.err (!%p453_p10)
}
  0x1a   :  { %s457_s16 = scalar_lea.vmem %s559_s21, 128  ;;  %p462_p12 = scmp.lt.s32.totalorder %s559_s21, %s559_s21 }
  0x1b   :  { %p458_p11 = scmp.ne.s32.totalorder %s559_s21, %s457_s16  ;;  %p463_p13 = scmp.lt.s32.totalorder %s457_s16, %s457_s16 }
  0x1d   :  { %p464_p0 = por %p463_p13, %p462_p12 }
  0x1f   :  { %p465_p1 = pnand %p464_p0, %p458_p11 }
  0x21   :  { %468 = shalt.err (!%p465_p1)
}
  0x22   :  { %24 = dma.hbm_to_vmem [thread:$0]  %s629_s0, 128, %s559_s21, [#allocation3], %s521_s30, %s521_s30, %s522_s6  }
  0x23   :  { %s523_s18 = smov [#allocation7]   ;;  %s469_s23 = scalar_lea.hbm %s632_s3, 1024 }
  0x24   :  { %s44_s19 = sshll.u32 %s523_s18, 4  ;;  %p470_p2 = scmp.ne.s32.totalorder %s632_s3, %s469_s23  ;;  %s45_s19 = int_to_ptr.vmem [resolvable:$true] %s44_s19 }
  0x25   :  { %p473_p3 = scmp.lt.u32.totalorder %s469_s23, %s632_s3 }
  0x27   :  { %p475_p4 = pnand %p473_p3, %p470_p2 }
  0x29   :  { %478 = shalt.err (!%p475_p4)
}
  0x2a   :  { %s479_s28 = scalar_lea.vmem %s45_s19, 1024  ;;  %p484_p6 = scmp.lt.s32.totalorder %s45_s19, %s45_s19 }
  0x2b   :  { %p480_p5 = scmp.ne.s32.totalorder %s45_s19, %s479_s28  ;;  %p485_p7 = scmp.lt.s32.totalorder %s479_s28, %s479_s28 }
  0x2d   :  { %p486_p8 = por %p485_p7, %p484_p6 }
  0x2f   :  { %p487_p9 = pnand %p486_p8, %p480_p5 }
  0x31   :  { %490 = shalt.err (!%p487_p9)
}
  0x32   :  { %50 = dma.hbm_to_vmem [thread:$0]  %s632_s3, 1024, %s45_s19, [#allocation6], %s521_s30, %s521_s30, %s522_s6  }
  0x33   :  { %513 = dma.done.wait [#allocation3], 128  }
  0x34   :  { %514 = vsyncadd [#allocation3], 4294967168 }
  0x35   :  { %515 = dma.done.wait [#allocation6], 2048  }
  0x36   :  { %516 = vsyncadd [#allocation6], 4294965248  ;;  %v524_v0 = vmov 0.0   ;;  %vm525_vm0 = vmmov 0   ;;  %v406_v1 = vld [vmem:[#allocation5] sm:$0xff]   ;;  %v407_v2 = vld [vmem:[#allocation5 + $0x8] sm:$0xff]   ;;  %v182_v18 = vlaneseq }
  0x37   :  { %356 = vmatprep.subr.bf16.mxu0 %v524_v0  ;;  %372 = vmatprep.mubr.msk.bf16.mxu0 %vm525_vm0, %v524_v0  ;;  %v408_v3 = vld [vmem:[#allocation5 + $0x10] sm:$0xff]   ;;  %v415_v4 = vld [vmem:[#allocation7] sm:$0xff]   ;;  %v409_v5 = vld [vmem:[#allocation5 + $0x18] sm:$0xff]   ;;  %s526_s7 = smov [#allocation8]  }
  0x38   :  { %376 = vmatprep.subr.bf16.mxu1 %v524_v0  ;;  %392 = vmatprep.mubr.msk.bf16.mxu1 %vm525_vm0, %v524_v0  ;;  %v416_v6 = vld [vmem:[#allocation7 + $0x8] sm:$0xff]   ;;  %v410_v7 = vld [vmem:[#allocation5 + $0x20] sm:$0xff]   ;;  %v417_v8 = vld [vmem:[#allocation7 + $0x10] sm:$0xff]   ;;  %v183_v21 = vshrl.u32 %v182_v18, 7 }
  0x39   :  { %357 = vmatpush3.bf16.msra.mxu0 %v406_v1  ;;  %377 = vmatpush3.bf16.msra.mxu1 %v415_v4  ;;  %v411_v9 = vld [vmem:[#allocation5 + $0x28] sm:$0xff]   ;;  %v412_v10 = vld [vmem:[#allocation5 + $0x30] sm:$0xff]   ;;  %v413_v11 = vld [vmem:[#allocation5 + $0x38] sm:$0xff]  }
  0x3a   :  { %358 = vmatprep.subr.bf16.mxu0 %v524_v0  ;;  %378 = vmatprep.subr.bf16.mxu1 %v524_v0  ;;  %v414_v12 = vld [vmem:[#allocation2] sm:$0xff]   ;;  %v419_v14 = vld [vmem:[#allocation7 + $0x20] sm:$0xff]   ;;  %v420_v15 = vld [vmem:[#allocation7 + $0x28] sm:$0xff]   ;;  %v184_v23 = vsub.s32 0, %v183_v21 }
  0x3b   :  { %v418_v13 = vld [vmem:[#allocation7 + $0x18] sm:$0xff]   ;;  %v421_v16 = vld [vmem:[#allocation7 + $0x30] sm:$0xff]  }
  0x3c   :  { %v422_v17 = vld [vmem:[#allocation7 + $0x38] sm:$0xff]  }
  0x3d   :  { %359 = vmatpush3.bf16.msra.mxu0 %v407_v2  ;;  %379 = vmatpush3.bf16.msra.mxu1 %v416_v6  ;;  %v177_v19 = vld [vmem:[%s631_s2] sm:$0x1]  ;;  %s307_s2 = sshll.u32 %s526_s7, 4  ;;  %s308_s2 = int_to_ptr.vmem [resolvable:$true] %s307_s2 }
  0x3e   :  { %360 = vmatprep.subr.bf16.mxu0 %v524_v0  ;;  %380 = vmatprep.subr.bf16.mxu1 %v524_v0  ;;  %v178_v20 = vpack.c.bf16 %v177_v19, %v177_v19  ;;  %v329_v32 = vld [vmem:[%s633_s4] ss:$0 sm:$0xff]  ;;  %s491_s8 = scalar_lea.vmem %s308_s2, 256  ;;  %p496_p11 = scmp.lt.s32.totalorder %s308_s2, %s308_s2 }
  0x3f   :  { %p492_p10 = scmp.ne.s32.totalorder %s308_s2, %s491_s8  ;;  %p497_p12 = scmp.lt.s32.totalorder %s491_s8, %s491_s8 }
  0x40   :  { %v180_v22 = vpack.i.b16 %v178_v20, %v178_v20 }
  0x41   :  { %361 = vmatpush3.bf16.msra.mxu0 %v408_v3  ;;  %381 = vmatpush3.bf16.msra.mxu1 %v417_v8  ;;  %p498_p13 = por %p497_p12, %p496_p11 }
  0x42   :  { %362 = vmatprep.subr.bf16.mxu0 %v524_v0  ;;  %382 = vmatprep.subr.bf16.mxu1 %v524_v0  ;;  %v185_v26 = vrot.slane %v180_v22, %v184_v23 }
  0x43   :  { %p499_p0 = pnand %p498_p13, %p492_p10 }
  0x45   :  { %363 = vmatpush3.bf16.msra.mxu0 %v409_v5  ;;  %383 = vmatpush3.bf16.msra.mxu1 %v418_v13 }
  0x46   :  { %364 = vmatprep.subr.bf16.mxu0 %v524_v0  ;;  %384 = vmatprep.subr.bf16.mxu1 %v524_v0 }
  0x49   :  { %365 = vmatpush3.bf16.msra.mxu0 %v410_v7  ;;  %385 = vmatpush3.bf16.msra.mxu1 %v419_v14 }
  0x4a   :  { %366 = vmatprep.subr.bf16.mxu0 %v524_v0  ;;  %386 = vmatprep.subr.bf16.mxu1 %v524_v0 }
  0x4d   :  { %367 = vmatpush3.bf16.msra.mxu0 %v411_v9  ;;  %387 = vmatpush3.bf16.msra.mxu1 %v420_v15 }
  0x4e   :  { %368 = vmatprep.subr.bf16.mxu0 %v524_v0  ;;  %388 = vmatprep.subr.bf16.mxu1 %v524_v0 }
  0x51   :  { %369 = vmatpush3.bf16.msra.mxu0 %v412_v10  ;;  %389 = vmatpush3.bf16.msra.mxu1 %v421_v16 }
  0x52   :  { %370 = vmatprep.subr.bf16.mxu0 %v524_v0  ;;  %390 = vmatprep.subr.bf16.mxu1 %v524_v0 }
  0x55   :  { %371 = vmatpush3.bf16.msra.mxu0 %v413_v11  ;;  %391 = vmatpush3.bf16.msra.mxu1 %v422_v17 }
  0x58   :  { %373 = vmatmul.mubr.bf16.vlgmr.msra.gmra.mrb[0].mxu0 %v414_v12 }
 0x12b   :  { %v169_v24 = vpop.f32.mrb[0].mxu0 }
 0x12c   :  { %v374_v25 = vpop.f32.mrb[1].mxu0 }
 0x12d   :  { %v172_v27 = vpop.f32.mrb[2].mxu0 }
 0x12e   :  { %v176_v28 = vpack.c.bf16 %v172_v27, %v169_v24  ;;  %v375_v29 = vpop.f32.mrb[3].mxu0 }
 0x130   :  { %v186_v30 = vadd.bf16 %v185_v26, %v176_v28 }
 0x132   :  { %423 = vtanh.bf16 %v186_v30 }
 0x13d   :  { %v424_v31 = vpop.eup %423 }
 0x13e   :  { %393 = vmatmul.mubr.bf16.vlgmr.msra.gmra.mrb[0].mxu1 %v424_v31 }
 0x211   :  { %v293_v33 = vpop.f32.mrb[0].mxu1 }
 0x212   :  { %v294_v34 = vadd.f32 %v329_v32, %v293_v33  ;;  %v394_v35 = vpop.f32.mrb[1].mxu1 }
 0x213   :  { %v296_v36 = vpop.f32.mrb[2].mxu1 }
 0x214   :  { %300 = vst [vmem:[#allocation8] sm:$0xff] %v294_v34  ;;  %v297_v37 = vadd.f32 %v329_v32, %v296_v36  ;;  %v395_v38 = vpop.f32.mrb[3].mxu1 }
 0x216   :  { %301 = vst [vmem:[#allocation8 + $0x8] sm:$0xff] %v297_v37 }
 0x217   :  { %502 = shalt.err (!%p499_p0)
}
 0x218   :  { %s503_s10 = scalar_lea.hbm %s634_s5, 256 }
 0x219   :  { %p504_p1 = scmp.ne.s32.totalorder %s634_s5, %s503_s10  ;;  %p507_p2 = scmp.lt.u32.totalorder %s503_s10, %s634_s5 }
 0x21b   :  { %p509_p3 = pnand %p507_p2, %p504_p1 }
 0x21d   :  { %512 = shalt.err (!%p509_p3)
}
 0x21e   :  { %s527_s15 = smov 128   ;;  %s528_s16 = smov 8  }
 0x21f   :  { %313 = dma.vmem_to_hbm [thread:$0]  %s308_s2, 256, %s634_s5, [#allocation4], %s527_s15, %s527_s15, %s528_s16  }
 0x220   :  { %517 = dma.done.wait [#allocation4], 256  }
 0x221   :  { %518 = vsyncadd [#allocation4], 4294967040 }
 0x222   :  { %317 = vsyncpa [#allocation3], 1 }
 0x223   :  { %318 = vsyncpa [#allocation6], 1 }
 0x224   :  { %319 = vsyncpa [#allocation4], 1 }

</bundles_post_ra>
